<compile_context>
chip_gen: v6e
topology: v6e:2x2x1
jax: 0.10.0
libtpu: 0.0.40
codegen_flags: <defaults>
</compile_context>

<pallas_src>
import functools

import jax
import jax.numpy as jnp
import numpy as np
from jax import lax
from jax.experimental import pallas as pl
from jax.experimental.pallas import tpu as pltpu


def _vmem_bytes():
    """Per-core VMEM capacity; conservative 64 MiB fallback (v7x per-TC)."""
    try:
        return int(pltpu.get_tpu_info().vmem_capacity_bytes)
    except Exception:
        return 64 * 1024 * 1024


def _round_up(v, m):
    return ((v + m - 1) // m) * m


def rlgate_policy_kernel(x_ref, w_ref, b_ref, u_ref, adv_ref,
                         idx_ref, aux_ref, logits_ref, *, sub):
    """Per tile: logits -> softmax stats -> inverse-CDF sample -> aux partial."""
    tm = x_ref.shape[0]
    E = w_ref.shape[1]

    # One MXU matmul per tile (hoisted out of the chunk loop); the lane-sparse
    # [tm, E] logits live in a VMEM scratch, not vregs.
    x = x_ref[...].astype(jnp.float32)
    w = w_ref[...].astype(jnp.float32)
    b = b_ref[...].astype(jnp.float32)
    logits_ref[...] = jnp.dot(x, w, preferred_element_type=jnp.float32) + b

    n_chunks = tm // sub

    def chunk_body(c, acc):
        lo = pl.multiple_of(c * sub, sub)

        logits = logits_ref[pl.ds(lo, sub), :]            # [sub, E]
        m = jnp.max(logits, axis=-1, keepdims=True)       # [sub, 1]
        ex = jnp.exp(logits - m)                          # [sub, E]
        denom = jnp.sum(ex, axis=-1, keepdims=True)       # [sub, 1]

        # Inverse-CDF categorical sample (top_k = 1), all VPU work:
        # u >= cumsum(probs)  <=>  u * denom >= running sum of exp(logit - m)
        thresh = u_ref[pl.ds(lo, sub), :].astype(jnp.float32) * denom
        run = ex[:, 0:1]
        idx = (thresh >= run).astype(jnp.int32)
        for e in range(1, E):
            run = run + ex[:, e:e + 1]
            idx = idx + (thresh >= run).astype(jnp.int32)
        idx = jnp.minimum(idx, E - 1)                     # [sub, 1]

        # Selected logit via where-chain; log p(sel) = logit - m - log(denom)
        sel_logit = logits[:, 0:1]
        for e in range(1, E):
            sel_logit = jnp.where(idx == e, logits[:, e:e + 1], sel_logit)

        idx_ref[pl.ds(lo, sub), :] = idx

        sel_logp = sel_logit - m - jnp.log(denom)         # [sub, 1]
        adv = adv_ref[pl.ds(lo, sub), :].astype(jnp.float32)
        return acc - jnp.sum(adv * sel_logp, keepdims=True)

    acc = lax.fori_loop(0, n_chunks, chunk_body, jnp.zeros((1, 1), jnp.float32))

    # Per-tile partial; (1, 8, 128) keeps the store block (8, 128)-legal.
    aux_ref[...] = jnp.broadcast_to(acc, aux_ref.shape)


@jax.jit
def rlgate_forward(x, experts, weight, bias, baseline_value, rewards, u):
    """x: [B,T,D]  experts: [E,B,T,D]  weight: [D,E]  rewards, u: [B,T]."""
    B, T, D = x.shape
    E = weight.shape[1]
    BT = B * T

    x_isz = jnp.dtype(x.dtype).itemsize
    w_isz = jnp.dtype(weight.dtype).itemsize

    # Lane/sublane-padded footprints (review: count (tm,1)/[D,E] lane padding).
    Dp = _round_up(D, 128)
    Ep = _round_up(E, 128)

    vmem = _vmem_bytes()
    frac = 0.70 if vmem <= 64 * 1024 * 1024 else 0.85     # v7x vs v5e/v6e
    budget = frac * vmem

    # Double-buffered W/bias blocks + aux blocks + slack.
    wb_bytes = _round_up(D, 8) * Ep * w_isz + 8 * Ep * w_isz
    fixed = 2 * wb_bytes + 2 * 8 * 128 * 4 + (2 << 20)
    # Per-token bytes: 2x (x block + lane-padded u/adv/idx columns) + logits scratch.
    per_token = 2 * (Dp * x_isz + 3 * 128 * 4) + Ep * 4

    tm = int((budget - fixed) // per_token)
    tm = max(8, min(tm, 1024))            # pass 1 carries no expert stream
    bt8 = _round_up(BT, 8)
    tm = min(tm, bt8)
    tm = (tm // 64) * 64 if tm >= 64 else max(8, (tm // 8) * 8)
    sub = next(c for c in (64, 32, 16, 8) if tm % c == 0)

    BT_pad = _round_up(BT, tm)
    n_tiles = BT_pad // tm

    # ---- flatten; fold the baseline into the advantage (no VMEM scalar) -----
    xf = x.reshape(BT, D)
    uf = u.reshape(BT, 1).astype(jnp.float32)
    adv = (rewards.reshape(BT, 1).astype(jnp.float32)
           - jnp.asarray(baseline_value, jnp.float32))
    bia = bias.reshape(1, E)

    pad = BT_pad - BT
    if pad:
        xf = jnp.pad(xf, ((0, pad), (0, 0)))
        uf = jnp.pad(uf, ((0, pad), (0, 0)))
        adv = jnp.pad(adv, ((0, pad), (0, 0)))            # adv == 0 on pad rows

    # ---- explicit, lane-padding-aware VMEM budget ----------------------------
    blk_bytes = tm * Dp * x_isz + 3 * tm * 128 * 4 + 8 * 128 * 4
    needed = 2 * (blk_bytes + wb_bytes) + _round_up(tm, 8) * Ep * 4 + (1 << 20)
    vmem_limit = int(min(budget, max(2 * needed, 32 * 1024 * 1024)))
    vmem_limit = max(vmem_limit, int(needed))

    cost = pl.CostEstimate(
        flops=2 * BT_pad * D * E,
        transcendentals=BT_pad * (E + 1),
        bytes_accessed=int(BT_pad * D * x_isz + D * E * w_isz + 12 * BT_pad),
    )

    kernel = functools.partial(rlgate_policy_kernel, sub=sub)

    idx_out, aux_part = pl.pallas_call(
        kernel,
        out_shape=(
            jax.ShapeDtypeStruct((BT_pad, 1), jnp.int32),
            jax.ShapeDtypeStruct((n_tiles, 8, 128), jnp.float32),
        ),
        grid_spec=pltpu.PrefetchScalarGridSpec(
            num_scalar_prefetch=0,
            grid=(n_tiles,),
            in_specs=[
                pl.BlockSpec((tm, D), lambda i: (i, 0)),        # x rows
                pl.BlockSpec((D, E), lambda i: (0, 0)),         # policy weight
                pl.BlockSpec((1, E), lambda i: (0, 0)),         # policy bias
                pl.BlockSpec((tm, 1), lambda i: (i, 0)),        # uniforms
                pl.BlockSpec((tm, 1), lambda i: (i, 0)),        # advantages
            ],
            out_specs=(
                pl.BlockSpec((tm, 1), lambda i: (i, 0)),        # sampled idx
                pl.BlockSpec((1, 8, 128), lambda i: (i, 0, 0)),  # aux partials
            ),
            scratch_shapes=[pltpu.VMEM((tm, E), jnp.float32)],  # tile logits
        ),
        compiler_params=pltpu.CompilerParams(
            dimension_semantics=("parallel",),                  # per-tile aux
            vmem_limit_bytes=vmem_limit,
        ),
        cost_estimate=cost,
    )(xf, weight, bia, uf, adv)

    # ---- pass 2: gather ONLY the selected expert row per token --------------
    # Reads ~BT*D expert bytes instead of E*BT*D (top_k == 1, so /top_k is a noop).
    idx_bt = idx_out[:BT, 0]                                    # [BT] int32
    ef = experts.reshape(E, BT, D)
    gathered = jnp.take_along_axis(ef, idx_bt[None, :, None], axis=0)[0]
    final = gathered.reshape(B, T, D).astype(x.dtype)

    aux_loss = jnp.sum(aux_part[:, 0, 0]) / BT                  # mean over B*T
    return final, aux_loss


def rlgate_reference(x, experts, weight, bias, baseline_value, rewards, u):
    """Pure-JAX reference with the same inverse-CDF sampling (same uniforms)."""
    E = weight.shape[1]
    logits = jnp.einsum("btd,de->bte", x, weight) + bias
    probs = jax.nn.softmax(logits, axis=-1)
    cdf = jnp.cumsum(probs, axis=-1)
    idx = jnp.sum((u[..., None] >= cdf).astype(jnp.int32), axis=-1)
    idx = jnp.minimum(idx, E - 1)                                # [B,T]
    onehot = jax.nn.one_hot(idx, E, dtype=x.dtype)               # [B,T,E]
    final = jnp.einsum("bte,ebtd->btd", onehot, experts)
    sel_logp = jnp.sum(onehot * jnp.log(probs + 1e-9), axis=-1)  # [B,T]
    adv = rewards - baseline_value
    aux = -jnp.mean(adv * sel_logp)
    return final, aux


if __name__ == "__main__":
    B, T, D, E = 2, 8, 32, 4

    key = jax.random.PRNGKey(0)
    kx, kw, kb, ke, kr, ku = jax.random.split(key, 6)

    x = jax.random.normal(kx, (B, T, D), dtype=jnp.float32)
    weight = jax.random.normal(kw, (D, E), dtype=jnp.float32) * 0.1   # Linear W^T
    bias = jax.random.normal(kb, (E,), dtype=jnp.float32) * 0.1
    baseline_value = jnp.zeros((), dtype=jnp.float32)                 # init = 0.0
    experts = jax.random.normal(ke, (E, B, T, D), dtype=jnp.float32)
    rewards = jax.random.normal(kr, (B, T), dtype=jnp.float32)
    u = jax.random.uniform(ku, (B, T), dtype=jnp.float32)             # sampling rng

    final, aux_loss = rlgate_forward(x, experts, weight, bias,
                                     baseline_value, rewards, u)
    jax.block_until_ready((final, aux_loss))

    ref_final, ref_aux = rlgate_reference(x, experts, weight, bias,
                                          baseline_value, rewards, u)

    np.testing.assert_allclose(np.asarray(final), np.asarray(ref_final),
                               rtol=1e-5, atol=1e-5)
    np.testing.assert_allclose(float(aux_loss), float(ref_aux),
                               rtol=1e-4, atol=1e-5)

    print("KERNEL_OK")
</pallas_src>

<mosaic_0001>
module attributes {stable_mosaic.version = 11 : i64} {
  func.func @rlgate_policy_kernel(%arg0: i32, %arg1: memref<16x32xf32, #tpu.memory_space<vmem>>, %arg2: memref<32x4xf32, #tpu.memory_space<vmem>>, %arg3: memref<1x4xf32, #tpu.memory_space<vmem>>, %arg4: memref<16x1xf32, #tpu.memory_space<vmem>>, %arg5: memref<16x1xf32, #tpu.memory_space<vmem>>, %arg6: memref<16x1xi32, #tpu.memory_space<vmem>>, %arg7: memref<1x8x128xf32, #tpu.memory_space<vmem>>, %arg8: memref<16x4xf32, #tpu.memory_space<vmem>>) attributes {dimension_semantics = [#tpu.dimension_semantics<parallel>], iteration_bounds = array<i64: 1>, scalar_prefetch = 0 : i64, scratch_operands = 1 : i64, tpu.core_type = #tpu.core_type<tc>, window_params = [{transform_indices = @transform_0, window_bounds = array<i64: 16, 32>}, {pipeline_mode = #tpu.pipeline_mode<synchronous>, transform_indices = @transform_1, window_bounds = array<i64: 32, 4>}, {pipeline_mode = #tpu.pipeline_mode<synchronous>, transform_indices = @transform_2, window_bounds = array<i64: 1, 4>}, {transform_indices = @transform_3, window_bounds = array<i64: 16, 1>}, {transform_indices = @transform_4, window_bounds = array<i64: 16, 1>}, {transform_indices = @transform_5, window_bounds = array<i64: 16, 1>}, {transform_indices = @transform_6, window_bounds = array<i64: 1, 8, 128>}]} {
    %c0 = arith.constant 0 : index
    %c0_0 = arith.constant 0 : index
    %0 = vector.load %arg1[%c0, %c0_0] : memref<16x32xf32, #tpu.memory_space<vmem>>, vector<16x32xf32>
    %c0_1 = arith.constant 0 : index
    %c0_2 = arith.constant 0 : index
    %1 = vector.load %arg2[%c0_1, %c0_2] : memref<32x4xf32, #tpu.memory_space<vmem>>, vector<32x4xf32>
    %c0_3 = arith.constant 0 : index
    %c0_4 = arith.constant 0 : index
    %2 = vector.load %arg3[%c0_3, %c0_4] : memref<1x4xf32, #tpu.memory_space<vmem>>, vector<1x4xf32>
    %cst = arith.constant dense<0.000000e+00> : vector<16x4xf32>
    %3 = tpu.matmul %0, %1, %cst {dimension_numbers = #tpu.dot_dimension_numbers<[1], [0], [0], [1], [0, 0, 1, 1], [], []>} : vector<16x32xf32>, vector<32x4xf32>, vector<16x4xf32> -> vector<16x4xf32>
    %4 = vector.broadcast %2 : vector<1x4xf32> to vector<16x4xf32>
    %5 = arith.addf %3, %4 : vector<16x4xf32>
    %c0_5 = arith.constant 0 : index
    %c0_6 = arith.constant 0 : index
    %6 = vector.load %arg8[%c0_5, %c0_6] : memref<16x4xf32, #tpu.memory_space<vmem>>, vector<16x4xf32>
    tpu.vector_store %arg8[%c0_5, %c0_6], %5 {strides = array<i32>} : memref<16x4xf32, #tpu.memory_space<vmem>>, vector<16x4xf32>,
    %cst_7 = arith.constant 0.000000e+00 : f32
    %7 = vector.broadcast %cst_7 : f32 to vector<1x1xf32>
    %c0_i32 = arith.constant 0 : i32
    %c16_i32 = arith.constant 16 : i32
    %8 = arith.muli %c0_i32, %c16_i32 : i32
    %9 = tpu.assume_multiple %8, 16 : i32
    %10 = arith.index_cast %9 : i32 to index
    %c0_8 = arith.constant 0 : index
    %11 = vector.load %arg8[%10, %c0_8] : memref<16x4xf32, #tpu.memory_space<vmem>>, vector<16x4xf32>
    %cst_9 = arith.constant dense<0xFF800000> : vector<16xf32>
    %12 = vector.multi_reduction <maximumf>, %11, %cst_9 [1] : vector<16x4xf32> to vector<16xf32>
    %13 = vector.shape_cast %12 : vector<16xf32> to vector<16x1xf32>
    %14 = vector.broadcast %13 : vector<16x1xf32> to vector<16x4xf32>
    %15 = arith.subf %11, %14 : vector<16x4xf32>
    %16 = math.exp %15 : vector<16x4xf32>
    %cst_10 = arith.constant dense<0.000000e+00> : vector<16xf32>
    %17 = vector.multi_reduction <add>, %16, %cst_10 [1] : vector<16x4xf32> to vector<16xf32>
    %18 = vector.shape_cast %17 : vector<16xf32> to vector<16x1xf32>
    %19 = arith.index_cast %9 : i32 to index
    %c0_11 = arith.constant 0 : index
    %20 = vector.load %arg4[%19, %c0_11] : memref<16x1xf32, #tpu.memory_space<vmem>>, vector<16x1xf32>
    %21 = arith.mulf %20, %18 : vector<16x1xf32>
    %22 = vector.extract_strided_slice %16 {offsets = [0, 0], sizes = [16, 1], strides = [1, 1]} : vector<16x4xf32> to vector<16x1xf32>
    %23 = arith.cmpf oge, %21, %22 : vector<16x1xf32>
    %24 = arith.extui %23 : vector<16x1xi1> to vector<16x1xi32>
    %25 = vector.extract_strided_slice %16 {offsets = [0, 1], sizes = [16, 1], strides = [1, 1]} : vector<16x4xf32> to vector<16x1xf32>
    %26 = arith.addf %22, %25 : vector<16x1xf32>
    %27 = arith.cmpf oge, %21, %26 : vector<16x1xf32>
    %28 = arith.extui %27 : vector<16x1xi1> to vector<16x1xi32>
    %29 = arith.addi %24, %28 : vector<16x1xi32>
    %30 = vector.extract_strided_slice %16 {offsets = [0, 2], sizes = [16, 1], strides = [1, 1]} : vector<16x4xf32> to vector<16x1xf32>
    %31 = arith.addf %26, %30 : vector<16x1xf32>
    %32 = arith.cmpf oge, %21, %31 : vector<16x1xf32>
    %33 = arith.extui %32 : vector<16x1xi1> to vector<16x1xi32>
    %34 = arith.addi %29, %33 : vector<16x1xi32>
    %35 = vector.extract_strided_slice %16 {offsets = [0, 3], sizes = [16, 1], strides = [1, 1]} : vector<16x4xf32> to vector<16x1xf32>
    %36 = arith.addf %31, %35 : vector<16x1xf32>
    %37 = arith.cmpf oge, %21, %36 : vector<16x1xf32>
    %38 = arith.extui %37 : vector<16x1xi1> to vector<16x1xi32>
    %39 = arith.addi %34, %38 : vector<16x1xi32>
    %c3_i32 = arith.constant 3 : i32
    %40 = vector.broadcast %c3_i32 : i32 to vector<16x1xi32>
    %41 = arith.minsi %39, %40 : vector<16x1xi32>
    %42 = vector.extract_strided_slice %11 {offsets = [0, 0], sizes = [16, 1], strides = [1, 1]} : vector<16x4xf32> to vector<16x1xf32>
    %c1_i32 = arith.constant 1 : i32
    %43 = vector.broadcast %c1_i32 : i32 to vector<16x1xi32>
    %44 = arith.cmpi eq, %41, %43 : vector<16x1xi32>
    %45 = vector.extract_strided_slice %11 {offsets = [0, 1], sizes = [16, 1], strides = [1, 1]} : vector<16x4xf32> to vector<16x1xf32>
    %46 = arith.select %44, %45, %42 : vector<16x1xi1>, vector<16x1xf32>
    %c2_i32 = arith.constant 2 : i32
    %47 = vector.broadcast %c2_i32 : i32 to vector<16x1xi32>
    %48 = arith.cmpi eq, %41, %47 : vector<16x1xi32>
    %49 = vector.extract_strided_slice %11 {offsets = [0, 2], sizes = [16, 1], strides = [1, 1]} : vector<16x4xf32> to vector<16x1xf32>
    %50 = arith.select %48, %49, %46 : vector<16x1xi1>, vector<16x1xf32>
    %c3_i32_12 = arith.constant 3 : i32
    %51 = vector.broadcast %c3_i32_12 : i32 to vector<16x1xi32>
    %52 = arith.cmpi eq, %41, %51 : vector<16x1xi32>
    %53 = vector.extract_strided_slice %11 {offsets = [0, 3], sizes = [16, 1], strides = [1, 1]} : vector<16x4xf32> to vector<16x1xf32>
    %54 = arith.select %52, %53, %50 : vector<16x1xi1>, vector<16x1xf32>
    %55 = arith.index_cast %9 : i32 to index
    %c0_13 = arith.constant 0 : index
    %56 = vector.load %arg6[%55, %c0_13] : memref<16x1xi32, #tpu.memory_space<vmem>>, vector<16x1xi32>
    tpu.vector_store %arg6[%55, %c0_13], %41 {strides = array<i32>} : memref<16x1xi32, #tpu.memory_space<vmem>>, vector<16x1xi32>,
    %57 = arith.subf %54, %13 : vector<16x1xf32>
    %58 = math.log %18 : vector<16x1xf32>
    %59 = arith.subf %57, %58 : vector<16x1xf32>
    %60 = arith.index_cast %9 : i32 to index
    %c0_14 = arith.constant 0 : index
    %61 = vector.load %arg5[%60, %c0_14] : memref<16x1xf32, #tpu.memory_space<vmem>>, vector<16x1xf32>
    %62 = arith.mulf %61, %59 : vector<16x1xf32>
    %63 = vector.shape_cast %62 : vector<16x1xf32> to vector<1x16x1xf32>
    %cst_15 = arith.constant dense<0.000000e+00> : vector<1xf32>
    %64 = vector.multi_reduction <add>, %63, %cst_15 [1, 2] : vector<1x16x1xf32> to vector<1xf32>
    %65 = vector.shape_cast %64 : vector<1xf32> to vector<1x1x1xf32>
    %66 = vector.extract %65[0, 0, 0] : f32 from vector<1x1x1xf32>
    %67 = vector.broadcast %66 : f32 to vector<1x1xf32>
    %68 = arith.subf %7, %67 : vector<1x1xf32>
    %c1_i32_16 = arith.constant 1 : i32
    %69 = vector.shape_cast %68 : vector<1x1xf32> to vector<1x1x1xf32>
    %70 = vector.broadcast %69 : vector<1x1x1xf32> to vector<1x8x128xf32>
    %c0_17 = arith.constant 0 : index
    %c0_18 = arith.constant 0 : index
    %c0_19 = arith.constant 0 : index
    %71 = vector.load %arg7[%c0_17, %c0_18, %c0_19] : memref<1x8x128xf32, #tpu.memory_space<vmem>>, vector<1x8x128xf32>
    tpu.vector_store %arg7[%c0_17, %c0_18, %c0_19], %70 {strides = array<i32>} : memref<1x8x128xf32, #tpu.memory_space<vmem>>, vector<1x8x128xf32>,
    return
  }
  func.func @transform_0(%arg0: i32) -> (i32, i32) {
    %c0_i32 = arith.constant 0 : i32
    %c0_i32_0 = arith.constant 0 : i32
    return %arg0, %c0_i32 : i32, i32
  }
  func.func @transform_1(%arg0: i32) -> (i32, i32) {
    %c0_i32 = arith.constant 0 : i32
    %c0_i32_0 = arith.constant 0 : i32
    %c0_i32_1 = arith.constant 0 : i32
    return %c0_i32, %c0_i32_0 : i32, i32
  }
  func.func @transform_2(%arg0: i32) -> (i32, i32) {
    %c0_i32 = arith.constant 0 : i32
    %c0_i32_0 = arith.constant 0 : i32
    %c0_i32_1 = arith.constant 0 : i32
    return %c0_i32, %c0_i32_0 : i32, i32
  }
  func.func @transform_3(%arg0: i32) -> (i32, i32) {
    %c0_i32 = arith.constant 0 : i32
    %c0_i32_0 = arith.constant 0 : i32
    return %arg0, %c0_i32 : i32, i32
  }
  func.func @transform_4(%arg0: i32) -> (i32, i32) {
    %c0_i32 = arith.constant 0 : i32
    %c0_i32_0 = arith.constant 0 : i32
    return %arg0, %c0_i32 : i32, i32
  }
  func.func @transform_5(%arg0: i32) -> (i32, i32) {
    %c0_i32 = arith.constant 0 : i32
    %c0_i32_0 = arith.constant 0 : i32
    return %arg0, %c0_i32 : i32, i32
  }
  func.func @transform_6(%arg0: i32) -> (i32, i32, i32) {
    %c0_i32 = arith.constant 0 : i32
    %c0_i32_0 = arith.constant 0 : i32
    %c0_i32_1 = arith.constant 0 : i32
    return %arg0, %c0_i32, %c0_i32_0 : i32, i32, i32
  }
}

</mosaic_0001>

<bundles_post_ra>
// kernel: rlgate_forward.1
= control target key start
LH: loop header
LB: loop body
LE: loop exit
PB: predicated region body
PF: predicated region fallthrough
CT: control target
= control target key end

     0   :  { %vm35_vm0 = vcmask 261120   ;;  %vm117_vm1 = vcmask 31744   ;;  %v303_v34 = vmov 0   ;;  %vm228_vm6 = vcmask 7168   ;;  %s425_s1 = inlined_call_operand.vmem [shape: f32[32,4], index: 1, kind: input, shape index: {}]   ;;  %s426_s0 = inlined_call_operand.vmem [shape: f32[16,32], index: 0, kind: input, shape index: {}]   ;;  %s427_s2 = inlined_call_operand.vmem [shape: f32[1,4], index: 2, kind: input, shape index: {}]   ;;  %s428_s3 = inlined_call_operand.vmem [shape: f32[16,1], index: 3, kind: input, shape index: {}]   ;;  %s429_s5 = inlined_call_operand.vmem [shape: s32[16,1], index: 5, kind: output, shape index: {0}]   ;;  %s430_s4 = inlined_call_operand.vmem [shape: f32[16,1], index: 4, kind: input, shape index: {}]   ;;  %s431_s6 = inlined_call_operand.vmem [shape: f32[1,8,128], index: 6, kind: output, shape index: {1}]  }
   0x1   :  { %v27_v0 = vld [vmem:[%s425_s1 + $0x18] sm:$0xff]  ;;  %v26_v1 = vld [vmem:[%s425_s1 + $0x10] sm:$0xff]  ;;  %v22_v2 = vld [vmem:[%s426_s0] sm:$0xff] }
   0x2   :  { %275 = vmatprep.subr.mxu0 %v27_v0  ;;  %v25_v3 = vld [vmem:[%s425_s1 + $0x8] sm:$0xff]  ;;  %283 = vmatprep.mubr.msk.f32.mxu0 %vm35_vm0, %v22_v2  ;;  %v24_v4 = vld [vmem:[%s425_s1] sm:$0xff]  ;;  %s301_s1 = smov 125  }
   0x3   :  { %276 = vmatpush3.msra.mxu0 %v27_v0  ;;  %v23_v5 = vld [vmem:[%s426_s0 + $0x8] sm:$0xff]  ;;  %v266_v6 = vld [vmem:[%s427_s2] ss:$0 sm:$0xff]  ;;  %s300_s0 = smov 127   ;;  %s302_s2 = smov 126  }
   0x4   :  { %277 = vmatprep.subr.mxu0 %v26_v1  ;;  %v141_v28 = vld [vmem:[%s428_s3 + $0x8] sm:$0xff]  ;;  %v140_v49 = vld [vmem:[%s428_s3] sm:$0xff] }
   0x5   :  { %278 = vmatpush3.msra.mxu0 %v26_v1 }
   0x6   :  { %279 = vmatprep.subr.mxu0 %v25_v3 }
   0x7   :  { %280 = vmatpush3.msra.mxu0 %v25_v3 }
   0x8   :  { %281 = vmatprep.subr.mxu0 %v24_v4 }
   0x9   :  { %282 = vmatpush3.msra.mxu0 %v24_v4 }
   0xa   :  { %284 = vmatmul.mubr.msk.f32.vlgmr.msra.gmra.mxu0 %vm35_vm0, %v23_v5 }
  0xca   :  { %v285_v7 = vpop.f32.mrf.mxu0 }
  0xcb   :  { %v114_v8 = vadd.f32 %v285_v7, %v266_v6 }
  0xcc   :  { %v108_v9 = vpop.f32.mrf.mxu0 }
  0xcd   :  { %119 = vst.msk [vmem:[#allocation2 + $0x8] sm:$0xff] %vm117_vm1, %v114_v8  ;;  %v109_v10 = vadd.f32 %v266_v6, %v108_v9 }
  0xcf   :  { %118 = vst.msk [vmem:[#allocation2] sm:$0xff] %vm117_vm1, %v109_v10 }
  0xd4   :  { %v368_v13 = vld [vmem:[#allocation2 + $0x8] sm:$0xff] }
  0xd5   :  { %v125_v14 = vsel %vm117_vm1, %v368_v13, -inf }
  0xd6   :  { %v364_v11 = vld [vmem:[#allocation2] sm:$0xff] }
  0xd7   :  { %v122_v12 = vsel %vm117_vm1, %v364_v11, -inf }
  0xd8   :  { %123 = vmax.xlane.f32.xlu0 %v122_v12 }
  0xdc   :  { %126 = vmax.xlane.f32.xlu0 %v125_v14  ;;  %v240_v14 = vld [vmem:[%s430_s4 + $0x8] sm:$0xff] }
 0x161   :  { %v372_v15 = vpop.xlane.xlu0 %123 }
 0x162   :  { %v128_v16 = vsub.f32 %v364_v11, %v372_v15 }
 0x164   :  { %v130_v17 = vmul.f32 1.442695, %v128_v16 }
 0x165   :  { %v376_v18 = vpop.xlane.xlu0 %126 }
 0x166   :  { %292 = vpow2.f32 %v130_v17  ;;  %v129_v19 = vsub.f32 %v368_v13, %v376_v18 }
 0x168   :  { %v132_v20 = vmul.f32 1.442695, %v129_v19 }
 0x16a   :  { %294 = vpow2.f32 %v132_v20 }
 0x173   :  { %v380_v21 = vpop.eup %292 }
 0x174   :  { %150 = vrot.lane.b32.xlu0 %v380_v21, %s300_s0  ;;  %v134_v24 = vsel %vm117_vm1, %v380_v21, 0.0 }
 0x177   :  { %v295_v22 = vpop.eup %294 }
 0x178   :  { %178 = vrot.lane.b32.xlu0 %v380_v21, %s301_s1  ;;  %152 = vrot.lane.b32.xlu1 %v295_v22, %s300_s0  ;;  %v137_v23 = vsel %vm117_vm1, %v295_v22, 0.0 }
 0x17c   :  { %200 = vrot.lane.b32.xlu0 %v364_v11, %s300_s0  ;;  %166 = vrot.lane.b32.xlu1 %v295_v22, %s302_s2 }
 0x180   :  { %210 = vrot.lane.b32.xlu0 %v364_v11, %s302_s2  ;;  %180 = vrot.lane.b32.xlu1 %v295_v22, %s301_s1 }
 0x184   :  { %220 = vrot.lane.b32.xlu0 %v364_v11, %s301_s1 }
 0x1a4   :  { %138 = vadd.xlane.f32.xlu1 %v137_v23 }
 0x1b5   :  { %164 = vrot.lane.b32.xlu1 %v380_v21, %s302_s2 }
 0x1b9   :  { %202 = vrot.lane.b32.xlu1 %v368_v13, %s300_s0 }
 0x1bd   :  { %212 = vrot.lane.b32.xlu1 %v368_v13, %s302_s2 }
 0x1e1   :  { %135 = vadd.xlane.f32.xlu1 %v134_v24 }
 0x1e6   :  { %v151_v45 = vpop.permute.xlu0 %150 }
 0x1e7   :  { %v156_v47 = vadd.f32 %v380_v21, %v151_v45 }
 0x1ea   :  { %v153_v25 = vpop.permute.xlu1 %152  ;;  %v179_v48 = vpop.permute.xlu0 %178 }
 0x1eb   :  { %v157_v29 = vadd.f32 %v295_v22, %v153_v25 }
 0x1ee   :  { %v167_v26 = vpop.permute.xlu1 %166  ;;  %v201_v53 = vpop.permute.xlu0 %200 }
 0x1ef   :  { %v171_v31 = vadd.f32 %v167_v26, %v157_v29 }
 0x1f2   :  { %222 = vrot.lane.b32.xlu1 %v368_v13, %s301_s1  ;;  %v181_v27 = vpop.permute.xlu1 %180  ;;  %v211_v1 = vpop.permute.xlu0 %210 }
 0x1f3   :  { %v185_v33 = vadd.f32 %v181_v27, %v171_v31 }
 0x1f6   :  { %v221_v9 = vpop.permute.xlu0 %220 }
 0x22d   :  { %v139_v30 = vpop.xlane.xlu1 %138 }
 0x22e   :  { %v143_v32 = vmul.f32 %v141_v28, %v139_v30  ;;  %296 = vlog2.f32 %v139_v30 }
 0x230   :  { %vm145_vm2 = vcmp.ge.f32.partialorder %v143_v32, %v295_v22  ;;  %vm159_vm3 = vcmp.ge.f32.partialorder %v143_v32, %v157_v29  ;;  %vm173_vm4 = vcmp.ge.f32.partialorder %v143_v32, %v171_v31  ;;  %vm187_vm5 = vcmp.ge.f32.partialorder %v143_v32, %v185_v33 }
 0x231   :  { %v147_v35 = vsel %vm145_vm2, 1, %v303_v34  ;;  %v161_v36 = vsel %vm159_vm3, 1, %v303_v34  ;;  %v175_v38 = vsel %vm173_vm4, 1, %v303_v34  ;;  %v189_v40 = vsel %vm187_vm5, 1, %v303_v34  ;;  %v165_v43 = vpop.permute.xlu1 %164 }
 0x232   :  { %v163_v37 = vadd.s32 %v161_v36, %v147_v35  ;;  %v170_v50 = vadd.f32 %v165_v43, %v156_v47 }
 0x234   :  { %v177_v39 = vadd.s32 %v175_v38, %v163_v37  ;;  %v184_v54 = vadd.f32 %v179_v48, %v170_v50 }
 0x235   :  { %v203_v44 = vpop.permute.xlu1 %202 }
 0x236   :  { %v191_v41 = vadd.s32 %v189_v40, %v177_v39 }
 0x238   :  { %vm194_vm7 = vcmp.lt.s32.totalorder %v191_v41, 3 }
 0x239   :  { %v195_v42 = vsel %vm194_vm7, %v191_v41, 3  ;;  %v213_v46 = vpop.permute.xlu1 %212 }
 0x23a   :  { %230 = vst.msk [vmem:[%s429_s5 + $0x8] sm:$0xff] %vm228_vm6, %v195_v42  ;;  %vm197_vm8 = vcmp.eq.s32.totalorder %v195_v42, 1  ;;  %vm209_vm12 = vcmp.eq.s32.totalorder %v195_v42, 2  ;;  %vm219_vm14 = vcmp.eq.s32.totalorder %v195_v42, 3 }
 0x23b   :  { %v207_v55 = vsel %vm197_vm8, %v203_v44, %v368_v13  ;;  %v297_v3 = vpop.eup %296 }
 0x23c   :  { %v217_v61 = vsel %vm209_vm12, %v213_v46, %v207_v55  ;;  %v236_v6 = vmul.f32 0.6931472, %v297_v3 }
 0x26a   :  { %v136_v51 = vpop.xlane.xlu1 %135 }
 0x26b   :  { %v142_v52 = vmul.f32 %v140_v49, %v136_v51  ;;  %298 = vlog2.f32 %v136_v51 }
 0x26d   :  { %vm144_vm9 = vcmp.ge.f32.partialorder %v142_v52, %v380_v21  ;;  %vm158_vm10 = vcmp.ge.f32.partialorder %v142_v52, %v156_v47  ;;  %vm172_vm11 = vcmp.ge.f32.partialorder %v142_v52, %v170_v50  ;;  %vm186_vm13 = vcmp.ge.f32.partialorder %v142_v52, %v184_v54 }
 0x26e   :  { %v146_v56 = vsel %vm144_vm9, 1, %v303_v34  ;;  %v160_v57 = vsel %vm158_vm10, 1, %v303_v34  ;;  %v223_v59 = vpop.permute.xlu1 %222  ;;  %v174_v60 = vsel %vm172_vm11, 1, %v303_v34  ;;  %v188_v63 = vsel %vm186_vm13, 1, %v303_v34 }
 0x26f   :  { %v162_v58 = vadd.s32 %v160_v57, %v146_v56  ;;  %v227_v0 = vsel %vm219_vm14, %v223_v59, %v217_v61 }
 0x270   :  { %v232_v4 = vsub.f32 %v227_v0, %v376_v18  ;;  %v239_v18 = vld [vmem:[%s430_s4] sm:$0xff] }
 0x271   :  { %v176_v62 = vadd.s32 %v174_v60, %v162_v58 }
 0x272   :  { %v238_v10 = vsub.f32 %v232_v4, %v236_v6 }
 0x273   :  { %v190_v2 = vadd.s32 %v188_v63, %v176_v62 }
 0x274   :  { %v242_v20 = vmul.f32 %v240_v14, %v238_v10 }
 0x275   :  { %vm192_vm15 = vcmp.lt.s32.totalorder %v190_v2, 3 }
 0x276   :  { %v193_v5 = vsel %vm192_vm15, %v190_v2, 3  ;;  %v244_v22 = vsel %vm228_vm6, %v242_v20, 0.0 }
 0x277   :  { %vm196_vm0 = vcmp.eq.s32.totalorder %v193_v5, 1  ;;  %vm208_vm1 = vcmp.eq.s32.totalorder %v193_v5, 2  ;;  %229 = vst.msk [vmem:[%s429_s5] sm:$0xff] %vm228_vm6, %v193_v5  ;;  %vm218_vm2 = vcmp.eq.s32.totalorder %v193_v5, 3 }
 0x278   :  { %v299_v7 = vpop.eup %298  ;;  %v206_v8 = vsel %vm196_vm0, %v201_v53, %v364_v11 }
 0x279   :  { %v216_v12 = vsel %vm208_vm1, %v211_v1, %v206_v8  ;;  %v234_v16 = vmul.f32 0.6931472, %v299_v7 }
 0x27a   :  { %v226_v13 = vsel %vm218_vm2, %v221_v9, %v216_v12 }
 0x27b   :  { %v231_v17 = vsub.f32 %v226_v13, %v372_v15 }
 0x27d   :  { %v237_v19 = vsub.f32 %v231_v17, %v234_v16 }
 0x27f   :  { %v241_v21 = vmul.f32 %v239_v18, %v237_v19 }
 0x281   :  { %v243_v11 = vsel %vm228_vm6, %v241_v21, 0.0 }
 0x282   :  { %v245_v23 = vadd.f32 %v244_v22, %v243_v11 }
 0x284   :  { %246 = vadd.xlane.f32.xlu0 %v245_v23 }
 0x30d   :  { %v247_v24 = vpop.xlane.xlu0 %246 }
 0x30e   :  { %v248_v25 = vrot.slane %v247_v24, 4 }
 0x310   :  { %v249_v26 = vadd.f32 %v248_v25, %v247_v24 }
 0x312   :  { %v250_v27 = vrot.slane %v249_v26, 2 }
 0x314   :  { %v251_v28 = vadd.f32 %v250_v27, %v249_v26 }
 0x316   :  { %v252_v29 = vrot.slane %v251_v28, 1 }
 0x318   :  { %v253_v15 = vadd.f32 %v252_v29, %v251_v28 }
 0x31a   :  { %286 = vpush %v253_v15 }
 0x34b   :  { %s287_s5 = spop %286 }
 0x34c   :  { %v255_v30 = vstv %s287_s5 }
 0x34d   :  { %v256_v31 = vsub.f32 0.0, %v255_v30 }
 0x34f   :  { %257 = vst [vmem:[%s431_s6] sm:$0xff] %v256_v31 }

</bundles_post_ra>
